<compile_context>
chip_gen: v6e
topology: v6e:2x2x1
jax: 0.10.0
libtpu: 0.0.40
codegen_flags: <defaults>
</compile_context>

<pallas_src>
import jax
import jax.numpy as jnp
import numpy as np
from jax.experimental import pallas as pl
from jax.experimental.pallas import tpu as pltpu


# ----------------------------------------------------------------------------
# Path 1: resident weight in VMEM, one-hot MXU matmul (small vocabularies).
# ----------------------------------------------------------------------------
def _onehot_matmul_kernel(vlen_ref, ids_ref, w_ref, lhs_ref, pool_ref):
    # vlen_ref: (B,)        int32, SMEM (scalar prefetch)
    # ids_ref : (1, ts, 1)  int32, VMEM (token ids, sublane-major)
    # w_ref   : (V, H)      VMEM, resident (constant index_map -> DMA'd once)
    # lhs_ref : (1, ts, H)  output tile
    # pool_ref: (1, 1, H)   f32 pooler accumulator (resident across seq tiles)
    b = pl.program_id(0)
    st = pl.program_id(1)
    ts = lhs_ref.shape[1]
    V, H = w_ref.shape

    vlen = vlen_ref[b]

    @pl.when(st == 0)
    def _():
        pool_ref[...] = jnp.zeros_like(pool_ref)

    ids = jnp.clip(ids_ref[0], 0, V - 1)                          # (ts, 1) int32
    cols = jax.lax.broadcasted_iota(jnp.int32, (ts, V), 1)
    onehot = (ids == cols).astype(w_ref.dtype)                    # (ts, V)
    rows = jnp.dot(onehot, w_ref[...],
                   preferred_element_type=jnp.float32)            # (ts, H) on MXU
    lhs_ref[...] = rows[None].astype(lhs_ref.dtype)

    # Pooler: sum of the first valid_length rows of this batch element.
    pos = st * ts + jax.lax.broadcasted_iota(jnp.int32, (ts, 1), 0)
    sel = (pos < vlen).astype(jnp.float32)                         # (ts, 1)
    pool_ref[...] += jnp.sum(rows * sel, axis=0).reshape(1, 1, H)


# ----------------------------------------------------------------------------
# Path 2: weight stays in HBM, per-token row-gather DMA (large vocabularies).
# ----------------------------------------------------------------------------
def _onehot_gather_kernel(ids_ref, vlen_ref, w_hbm, lhs_ref, pool_ref, copy_sem):
    # ids_ref : (B*S,) int32 SMEM (scalar prefetch, flat -> no sublane padding)
    # vlen_ref: (B,)   int32 SMEM (scalar prefetch)
    # w_hbm   : (V, H) weight left in HBM (memory_space=pl.ANY)
    # lhs_ref : (1, ts, H) output tile (VMEM)
    # pool_ref: (1, 1, H)  f32 pooler accumulator (resident across seq tiles)
    # copy_sem: one shared DMA semaphore for all row gathers
    b = pl.program_id(0)
    st = pl.program_id(1)
    n_st = pl.num_programs(1)
    ts = lhs_ref.shape[1]
    H = lhs_ref.shape[2]
    V = w_hbm.shape[0]

    # Hoist scalar SMEM reads above the DMA waits (.wait() breaks sst->sld
    # forwarding).
    vlen = vlen_ref[b]
    base = b * (n_st * ts) + st * ts

    # One row-gather DMA per token; all copies share one semaphore and land
    # directly in the output tile (no bounce buffer, no matmul).
    @pl.loop(0, ts)
    def _(i):
        tok = jnp.clip(ids_ref[base + i], 0, V - 1)
        pltpu.make_async_copy(
            w_hbm.at[pl.ds(tok, 1), :],           # (1, H) weight row in HBM
            lhs_ref.at[0, pl.ds(i, 1), :],        # (1, H) slot in the output tile
            copy_sem,
        ).start()

    # Zero the resident pooler accumulator while the gathers are in flight.
    @pl.when(st == 0)
    def _():
        pool_ref[...] = jnp.zeros_like(pool_ref)

    # Retire all ts row copies (each wait accounts for one (1, H) transfer).
    @pl.loop(0, ts)
    def _(i):
        pltpu.make_async_copy(
            w_hbm.at[pl.ds(0, 1), :],
            lhs_ref.at[0, pl.ds(0, 1), :],
            copy_sem,
        ).wait()

    # Pooler: prefix-sum of the first valid_length rows, accumulated per tile.
    rows = lhs_ref[0].astype(jnp.float32)                          # (ts, H)
    pos = st * ts + jax.lax.broadcasted_iota(jnp.int32, (ts, 1), 0)
    sel = (pos < vlen).astype(jnp.float32)
    pool_ref[...] += jnp.sum(rows * sel, axis=0).reshape(1, 1, H)


# ----------------------------------------------------------------------------
# Wrapper / dispatch.
# ----------------------------------------------------------------------------
def _pick_seq_tile(S, max_tile=512):
    """Largest multiple-of-8 divisor of S that is <= max_tile, else S itself."""
    if S <= max_tile:
        return S
    t = max_tile - (max_tile % 8)
    while t >= 8:
        if S % t == 0:
            return t
        t -= 8
    return S


def onehot_forward(input_ids, attn_mask, weight, *, seq_tile=None,
                   resident_vmem_budget=40 * 1024 * 1024,
                   force_gather=False):
    B, S = input_ids.shape
    V, H = weight.shape
    if seq_tile is None:
        seq_tile = _pick_seq_tile(S)
    assert S % seq_tile == 0, "seq_tile must divide S"
    assert seq_tile % 8 == 0 or seq_tile == S, "seq_tile must be a multiple of 8"
    n_st = S // seq_tile

    input_ids = input_ids.astype(jnp.int32)
    valid_len = jnp.sum(attn_mask.astype(jnp.int32), axis=1)        # (B,) int32
    out_dtype = weight.dtype
    esize = jnp.dtype(weight.dtype).itemsize

    # Rough per-step VMEM footprint of the resident path (double-buffered weight
    # worst case + lhs/ids tiles + pooler); conservative so it also fits within
    # v7x's 64 MiB physical VMEM.
    resident_bytes = (2 * V * H * esize
                      + 2 * seq_tile * H * esize
                      + 2 * seq_tile * 4
                      + 2 * H * 4)
    use_resident = (not force_gather) and resident_bytes <= resident_vmem_budget

    out_shape = (
        jax.ShapeDtypeStruct((B, S, H), out_dtype),      # last_hidden_state
        jax.ShapeDtypeStruct((B, 1, H), jnp.float32),    # pooler (lane-dense)
    )
    out_specs = (
        pl.BlockSpec((1, seq_tile, H), lambda b, st, *_: (b, st, 0)),
        pl.BlockSpec((1, 1, H), lambda b, st, *_: (b, 0, 0)),
    )

    if use_resident:
        ids_3d = input_ids.reshape(B, S, 1)        # sublane-major ids for the one-hot
        grid_spec = pltpu.PrefetchScalarGridSpec(
            num_scalar_prefetch=1,                               # valid_len -> SMEM
            grid=(B, n_st),
            in_specs=[
                pl.BlockSpec((1, seq_tile, 1), lambda b, st, *_: (b, st, 0)),
                pl.BlockSpec((V, H), lambda b, st, *_: (0, 0)),  # resident weight
            ],
            out_specs=out_specs,
        )
        lhs, pool3 = pl.pallas_call(
            _onehot_matmul_kernel,
            out_shape=out_shape,
            grid_spec=grid_spec,
            compiler_params=pltpu.CompilerParams(
                dimension_semantics=("parallel", "arbitrary"),
                vmem_limit_bytes=48 * 1024 * 1024),
        )(valid_len, ids_3d, weight)
    else:
        ids_flat = input_ids.reshape(B * S)        # 1-D SMEM: no sublane padding
        grid_spec = pltpu.PrefetchScalarGridSpec(
            num_scalar_prefetch=2,                               # ids, valid_len -> SMEM
            grid=(B, n_st),
            in_specs=[pl.BlockSpec(memory_space=pl.ANY)],        # weight stays in HBM
            out_specs=out_specs,
            scratch_shapes=[pltpu.SemaphoreType.DMA(())],        # one shared DMA sem
        )
        lhs, pool3 = pl.pallas_call(
            _onehot_gather_kernel,
            out_shape=out_shape,
            grid_spec=grid_spec,
            compiler_params=pltpu.CompilerParams(
                dimension_semantics=("parallel", "arbitrary")),
        )(ids_flat, valid_len, weight)

    return lhs, pool3[:, 0, :].astype(out_dtype)


if __name__ == "__main__":
    # Small synthetic "config": vocab_size=16, hidden_size=32; batch=2, seq=16.
    B, S, V, H = 2, 16, 16, 32

    key = jax.random.PRNGKey(0)
    k_w, k_ids = jax.random.split(key)

    # nn.Embedding default init: N(0, 1)
    weight = jax.random.normal(k_w, (V, H), dtype=jnp.float32)
    input_ids = jax.random.randint(k_ids, (B, S), 0, V, dtype=jnp.int32)

    # Prefix-style attention masks with different valid lengths
    # (13 spans two sequence tiles; 5 is a partial first tile).
    lengths = jnp.array([13, 5], dtype=jnp.int32)
    attn_mask = (jnp.arange(S, dtype=jnp.int32)[None, :]
                 < lengths[:, None]).astype(jnp.int32)

    # Pure-JAX reference for correctness.
    ref_lhs = weight[input_ids]                                        # (B, S, H)
    valid = attn_mask.sum(axis=1)
    ref_pool = jnp.stack(
        [ref_lhs[i, :valid[i]].sum(0) for i in range(B)], axis=0)      # (B, H)

    # Path 1: resident-weight / one-hot MXU fast path (small-vocab default).
    lhs1, pool1 = onehot_forward(input_ids, attn_mask, weight, seq_tile=8)
    jax.block_until_ready((lhs1, pool1))
    np.testing.assert_allclose(np.asarray(lhs1), np.asarray(ref_lhs),
                               rtol=1e-5, atol=1e-5)
    np.testing.assert_allclose(np.asarray(pool1), np.asarray(ref_pool),
                               rtol=1e-5, atol=1e-5)

    # Path 2: HBM row-gather fallback (large-vocab path), forced at small shapes.
    lhs2, pool2 = onehot_forward(input_ids, attn_mask, weight, seq_tile=8,
                                 force_gather=True)
    jax.block_until_ready((lhs2, pool2))
    np.testing.assert_allclose(np.asarray(lhs2), np.asarray(ref_lhs),
                               rtol=1e-5, atol=1e-5)
    np.testing.assert_allclose(np.asarray(pool2), np.asarray(ref_pool),
                               rtol=1e-5, atol=1e-5)

    print("KERNEL_OK")
</pallas_src>

<mosaic_0001>
module attributes {stable_mosaic.version = 11 : i64} {
  func.func @_onehot_matmul_kernel(%arg0: i32, %arg1: i32, %arg2: memref<2xi32, #tpu.memory_space<smem>>, %arg3: memref<1x8x1xi32, #tpu.memory_space<vmem>>, %arg4: memref<16x32xf32, #tpu.memory_space<vmem>>, %arg5: memref<1x8x32xf32, #tpu.memory_space<vmem>>, %arg6: memref<1x1x32xf32, #tpu.memory_space<vmem>>) attributes {dimension_semantics = [#tpu.dimension_semantics<parallel>, #tpu.dimension_semantics<arbitrary>], iteration_bounds = array<i64: 2, 2>, scalar_prefetch = 1 : i64, scratch_operands = 0 : i64, tpu.core_type = #tpu.core_type<tc>, window_params = [{transform_indices = @transform_0, window_bounds = array<i64: 1, 8, 1>}, {pipeline_mode = #tpu.pipeline_mode<synchronous>, transform_indices = @transform_1, window_bounds = array<i64: 16, 32>}, {transform_indices = @transform_2, window_bounds = array<i64: 1, 8, 32>}, {transform_indices = @transform_3, window_bounds = array<i64: 1, 1, 32>}]} {
    %0 = arith.index_cast %arg0 : i32 to index
    %1 = memref.load %arg2[%0] : memref<2xi32, #tpu.memory_space<smem>>
    %c0_i32 = arith.constant 0 : i32
    %2 = arith.cmpi eq, %arg1, %c0_i32 : i32
    %3 = arith.extui %2 : i1 to i32
    %c0_i32_0 = arith.constant 0 : i32
    %4 = arith.cmpi ne, %3, %c0_i32_0 : i32
    scf.if %4 {
      %cst_16 = arith.constant 0.000000e+00 : f32
      %35 = vector.broadcast %cst_16 : f32 to vector<1x1x32xf32>
      %c0_17 = arith.constant 0 : index
      %c0_18 = arith.constant 0 : index
      %c0_19 = arith.constant 0 : index
      %36 = vector.load %arg6[%c0_17, %c0_18, %c0_19] : memref<1x1x32xf32, #tpu.memory_space<vmem>>, vector<1x1x32xf32>
      tpu.vector_store %arg6[%c0_17, %c0_18, %c0_19], %35 {strides = array<i32>} : memref<1x1x32xf32, #tpu.memory_space<vmem>>, vector<1x1x32xf32>,
    } else {
    }
    %c0 = arith.constant 0 : index
    %c0_1 = arith.constant 0 : index
    %c0_2 = arith.constant 0 : index
    %5 = vector.load %arg3[%c0, %c0_1, %c0_2] : memref<1x8x1xi32, #tpu.memory_space<vmem>>, vector<1x8x1xi32>
    %6 = vector.shape_cast %5 : vector<1x8x1xi32> to vector<8x1xi32>
    %c0_i32_3 = arith.constant 0 : i32
    %c15_i32 = arith.constant 15 : i32
    %7 = vector.broadcast %c0_i32_3 : i32 to vector<8x1xi32>
    %8 = arith.maxsi %7, %6 : vector<8x1xi32>
    %9 = vector.broadcast %c15_i32 : i32 to vector<8x1xi32>
    %10 = arith.minsi %9, %8 : vector<8x1xi32>
    %11 = tpu.iota {dimensions = array<i32: 1>} : vector<8x16xi32>
    %12 = vector.broadcast %10 : vector<8x1xi32> to vector<8x16xi32>
    %13 = arith.cmpi eq, %12, %11 : vector<8x16xi32>
    %14 = arith.extui %13 : vector<8x16xi1> to vector<8x16xi32>
    %15 = arith.sitofp %14 : vector<8x16xi32> to vector<8x16xf32>
    %c0_4 = arith.constant 0 : index
    %c0_5 = arith.constant 0 : index
    %16 = vector.load %arg4[%c0_4, %c0_5] : memref<16x32xf32, #tpu.memory_space<vmem>>, vector<16x32xf32>
    %cst = arith.constant dense<0.000000e+00> : vector<8x32xf32>
    %17 = tpu.matmul %15, %16, %cst {dimension_numbers = #tpu.dot_dimension_numbers<[1], [0], [0], [1], [0, 0, 1, 1], [], []>} : vector<8x16xf32>, vector<16x32xf32>, vector<8x32xf32> -> vector<8x32xf32>
    %18 = vector.shape_cast %17 : vector<8x32xf32> to vector<1x8x32xf32>
    %c0_6 = arith.constant 0 : index
    %c0_7 = arith.constant 0 : index
    %c0_8 = arith.constant 0 : index
    %19 = vector.load %arg5[%c0_6, %c0_7, %c0_8] : memref<1x8x32xf32, #tpu.memory_space<vmem>>, vector<1x8x32xf32>
    tpu.vector_store %arg5[%c0_6, %c0_7, %c0_8], %18 {strides = array<i32>} : memref<1x8x32xf32, #tpu.memory_space<vmem>>, vector<1x8x32xf32>,
    %c8_i32 = arith.constant 8 : i32
    %20 = arith.muli %arg1, %c8_i32 : i32
    %21 = tpu.iota {dimensions = array<i32: 0>} : vector<8x1xi32>
    %22 = vector.broadcast %20 : i32 to vector<8x1xi32>
    %23 = arith.addi %22, %21 : vector<8x1xi32>
    %24 = vector.broadcast %1 : i32 to vector<8x1xi32>
    %25 = arith.cmpi slt, %23, %24 : vector<8x1xi32>
    %26 = arith.extui %25 : vector<8x1xi1> to vector<8x1xi32>
    %27 = arith.sitofp %26 : vector<8x1xi32> to vector<8x1xf32>
    %c0_9 = arith.constant 0 : index
    %c0_10 = arith.constant 0 : index
    %c0_11 = arith.constant 0 : index
    %28 = vector.load %arg6[%c0_9, %c0_10, %c0_11] : memref<1x1x32xf32, #tpu.memory_space<vmem>>, vector<1x1x32xf32>
    %29 = vector.broadcast %27 : vector<8x1xf32> to vector<8x32xf32>
    %30 = arith.mulf %17, %29 : vector<8x32xf32>
    %cst_12 = arith.constant dense<0.000000e+00> : vector<32xf32>
    %31 = vector.multi_reduction <add>, %30, %cst_12 [0] : vector<8x32xf32> to vector<32xf32>
    %32 = vector.shape_cast %31 : vector<32xf32> to vector<1x1x32xf32>
    %33 = arith.addf %28, %32 : vector<1x1x32xf32>
    %c0_13 = arith.constant 0 : index
    %c0_14 = arith.constant 0 : index
    %c0_15 = arith.constant 0 : index
    %34 = vector.load %arg6[%c0_13, %c0_14, %c0_15] : memref<1x1x32xf32, #tpu.memory_space<vmem>>, vector<1x1x32xf32>
    tpu.vector_store %arg6[%c0_13, %c0_14, %c0_15], %33 {strides = array<i32>} : memref<1x1x32xf32, #tpu.memory_space<vmem>>, vector<1x1x32xf32>,
    return
  }
  func.func @transform_0(%arg0: i32, %arg1: i32, %arg2: memref<2xi32, #tpu.memory_space<smem>>) -> (i32, i32, i32) {
    %c0_i32 = arith.constant 0 : i32
    %c0_i32_0 = arith.constant 0 : i32
    return %arg0, %arg1, %c0_i32 : i32, i32, i32
  }
  func.func @transform_1(%arg0: i32, %arg1: i32, %arg2: memref<2xi32, #tpu.memory_space<smem>>) -> (i32, i32) {
    %c0_i32 = arith.constant 0 : i32
    %c0_i32_0 = arith.constant 0 : i32
    %c0_i32_1 = arith.constant 0 : i32
    return %c0_i32, %c0_i32_0 : i32, i32
  }
  func.func @transform_2(%arg0: i32, %arg1: i32, %arg2: memref<2xi32, #tpu.memory_space<smem>>) -> (i32, i32, i32) {
    %c0_i32 = arith.constant 0 : i32
    %c0_i32_0 = arith.constant 0 : i32
    return %arg0, %arg1, %c0_i32 : i32, i32, i32
  }
  func.func @transform_3(%arg0: i32, %arg1: i32, %arg2: memref<2xi32, #tpu.memory_space<smem>>) -> (i32, i32, i32) {
    %c0_i32 = arith.constant 0 : i32
    %c0_i32_0 = arith.constant 0 : i32
    %c0_i32_1 = arith.constant 0 : i32
    return %arg0, %c0_i32, %c0_i32_0 : i32, i32, i32
  }
}

</mosaic_0001>

<bundles_post_ra>
// kernel: tpu_custom_call.1
= control target key start
LH: loop header
LB: loop body
LE: loop exit
PB: predicated region body
PF: predicated region fallthrough
CT: control target
= control target key end

     0   :  { %s1048_s0 = inlined_call_operand.vmem [shape: s32[2], index: 0, kind: input, shape index: {}]   ;;  %s1049_s1 = inlined_call_operand.vmem [shape: s32[2,16,1], index: 1, kind: input, shape index: {}]   ;;  %s1050_s2 = inlined_call_operand.vmem [shape: f32[16,32], index: 2, kind: input, shape index: {}]   ;;  %s1051_s3 = inlined_call_operand.hbm [shape: f32[2,16,32], index: 3, kind: output, shape index: {0}]   ;;  %s1052_s4 = inlined_call_operand.hbm [shape: f32[2,1,32], index: 4, kind: output, shape index: {1}]  }
   0x1   :  { %s10_s17 = sshll.u32 %s1048_s0, 4  ;;  %s11_s17 = int_to_ptr.vmem [resolvable:$true] %s10_s17 }
   0x2   :  { %s604_s18 = scalar_lea.vmem %s11_s17, 16  ;;  %p609_p1 = scmp.lt.s32.totalorder %s11_s17, %s11_s17 }
   0x3   :  { %p605_p0 = scmp.ne.s32.totalorder %s11_s17, %s604_s18  ;;  %p610_p2 = scmp.lt.s32.totalorder %s604_s18, %s604_s18 }
   0x5   :  { %p611_p3 = por %p610_p2, %p609_p1 }
   0x7   :  { %p612_p4 = pnand %p611_p3, %p605_p0 }
   0x9   :  { %615 = shalt.err (!%p612_p4)  }
   0xa   :  { %s766_s19 = smov [#allocation3]  }
   0xb   :  { %13 = dma.vmem_to_smem %s11_s17, 16, %s766_s19, [#allocation2] }
   0xc   :  { %712 = dma.done.wait [#allocation2], 16 }
   0xd   :  { %713 = vsyncadd [#allocation2], 4294967280 }
   0xe   :  { %15 = sfence }
   0xf   :  { %16 = vsyncpa [#allocation5], 0 }
  0x10   :  { %18 = vsyncpa [#allocation5 + $0x1], 0 }
  0x11   :  { %19 = vsyncpa [#allocation7], 0 }
  0x12   :  { %21 = vsyncpa [#allocation7 + $0x1], 0  ;;  %s801_s20 = smov 0   ;;  %s803_s0 = smov 0  }
  0x13   :  { %s805_s21 = smov 0   ;;  %s807_s22 = smov 0  }
  0x14   :  { %s809_s23 = smov 0   ;;  %s811_s24 = smov 0  }
  0x15   :  { %s813_s25 = smov 0   ;;  %s815_s26 = smov 0  }
  0x16   :  { %s817_s27 = smov 0   ;;  %s819_s28 = smov 0  }
  0x17   :  { %s821_s29 = smov 0  }
  0x18 LB: > { %1058 = sst [smem:[#allocation11_spill]] %s744_s24  ;;  %s469_s30 = sadd.s32 4294967295, %s764_s29   ;;  %s764_s29 = sphi %s821_s29, %s27_s29   ;;  %s760_s28 = sphi %s819_s28, %s1076_s28   ;;  %s756_s27 = sphi %s817_s27, %s1075_s27   ;;  %s752_s26 = sphi %s815_s26, %s1074_s26   ;;  %s748_s25 = sphi %s813_s25, %s1073_s25   ;;  %s744_s24 = sphi %s811_s24, %s1072_s24   ;;  %s740_s23 = sphi %s809_s23, %s1081_s23   ;;  %s736_s22 = sphi %s807_s22, %s1080_s22   ;;  %s732_s21 = sphi %s805_s21, %s1079_s21   ;;  %s728_s0 = sphi %s803_s0, %s1078_s0   ;;  %s724_s20 = sphi %s801_s20, %s1077_s20  }
  0x19   : > { %1059 = sst [smem:[#allocation12_spill]] %s756_s27  ;;  %s470_s5 = sadd.s32 4294967294, %s764_s29  }
  0x1a   : > { %1060 = sst [smem:[#allocation13_spill]] %s760_s28  ;;  %s36_s6 = sadd.s32 1, %s756_s27 }
  0x1b   : > { %s39_s7 = sadd.s32 1, %s760_s28  ;;  %p37_p5 = scmp.ge.s32.totalorder %s36_s6, 2 }
  0x1c   : > { %s97_s8 = sadd.s32 1, %s744_s24  ;;  %p107_p6 = scmp.ne.s32.totalorder %s744_s24, %s740_s23 }
  0x1d   : > { %p863_p7 = scmp.eq.s32.totalorder %s469_s30, 3  ;;  %s1083_s6 = smov (%p37_p5, %s36_s6), 0 }
  0x1e   : > { %1062 = sst [smem:[#allocation14_spill]] %s1083_s6  ;;  %s1085_s7 = smov (!%p37_p5, %s39_s7), %s760_s28 }
  0x1f   : > { %s93_s10 = ssub.s32 %s756_s27, %s1083_s6  ;;  %p874_p8 = por %p863_p7, %p107_p6 }
  0x20   : > { %p41_p9 = scmp.ge.s32.totalorder %s1085_s7, 2  ;;  %p113_p10 = scmp.ne.s32.totalorder %s740_s23, %s736_s22 }
  0x21   : > { %p880_p11 = scmp.eq.s32.totalorder %s470_s5, 3  ;;  %s123_s13 = sadd.s32 1, %s732_s21 }
  0x22   : > { %s1087_s7 = smov (%p41_p9, %s1085_s7), 0  ;;  %p133_p13 = scmp.ne.s32.totalorder %s732_s21, %s728_s0 }
  0x23   : > { %1065 = sst [smem:[#allocation15_spill]] %s1087_s7  ;;  %p889_p12 = por %p880_p11, %p113_p10 }
  0x24   : > { %s92_s15 = ssub.s32 %s760_s28, %s1087_s7  ;;  %p139_p0 = scmp.ne.s32.totalorder %s728_s0, %s724_s20 }
  0x25   : > { %s94_s16 = sor.u32 %s93_s10, %s92_s15  ;;  %p121_p1 = scmp.eq.s32.totalorder %s92_s15, 0 }
  0x26   : > { %p95_p2 = scmp.eq.s32.totalorder %s94_s16, 0  ;;  %p901_p3 = por %p133_p13, %p863_p7 }
  0x27   : > { %s906_s18 = scalar_select %p121_p1, %s732_s21, %s123_s13  }
  0x28   : > { %s909_s19 = scalar_select %p95_p2, %s744_s24, %s97_s8  }
  0x29   : > { %p913_p4 = por %p139_p0, %p880_p11  ;;  %p473_p5 = scmp.ge.s32.totalorder %s764_s29, 1 }
  0x2a   : > { %1068 = sst [smem:[#allocation16_spill]] %s909_s19  ;;  %p172_p6 = scmp.lt.s32.totalorder %s764_s29, 5 }
  0x2b   : > { %s1069_s30 = scalar_select %p913_p4, 1, 0 }
  0x2c   : > { %p173_p9 = pnand %p473_p5, %p172_p6 }
  0x2d   : > { %s194_s5 = sand.u32 (!%p173_p9), 1, %s740_s23   ;;  %s201_s8 = sand.u32 (!%p173_p9), 1, %s728_s0  }
  0x2e   : > { %176 = sbr.rel (%p173_p9) target bundleno = 425 (0x1a9), region = 28  ;;  %s923_s9 = sshll.u32 (!%p173_p9), %s194_s5, 3 }
  0x2f   : > { %p203_p7 = scmp.lt.s32.totalorder (!%p173_p9), %s752_s26, 1  ;;  %p205_p10 = scmp.lt.s32.totalorder (!%p173_p9), %s748_s25, 1 }
  0x30   : > { %s928_s10 = sld [smem:[#allocation3 + %s752_s26]] (!%p173_p9)  ;;  %s196_s19 = scalar_lea.vmem (!%p173_p9), [#allocation4], %s923_s9 }
  0x31   : > { %s938_s24 = scalar_lea.vmem (!%p173_p9), [#allocation6], %s201_s8  ;;  %p477_p11 = scmp.ne.s32.totalorder (!%p173_p9), %s748_s25, 0 }
  0x33   : > { %s204_s12 = scalar_select %p203_p7, %s752_s26, 1 }
  0x34   : > { %s206_s13 = scalar_select %p205_p10, %s748_s25, 1 }
  0x35   : > { %s475_s15 = sshll.u32 %s204_s12, 1  ;;  %215 = sbr.rel (%p477_p11) target bundleno = 60 (0x3c), region = 32 }
  0x36   : > { %s208_s16 = sadd.s32 %s475_s15, %s206_s13 }
  0x37   : > { %s476_s7 = sshll.u32 %s208_s16, 3 }
  0x38   : > { %s210_s27 = scalar_lea.vmem %s1049_s1, %s476_s7 }
  0x3a   : > { %vm216_vm0 = vcmask 253952   ;;  %v767_v0 = vmov 0.0  }
  0x3b   : > { %217 = vst.msk [vmem:[%s938_s24] sm:$0x1] %vm216_vm0, %v767_v0 }
  0x3c PF: > { %v218_v1 = vld [vmem:[%s210_s27] sm:$0xff]  ;;  %v232_v2 = vld [vmem:[%s1050_s2 + $0x8] sm:$0xff]  ;;  %v768_v3 = vmov 0   ;;  %v769_v4 = vmov 0.0   ;;  %vm770_vm2 = vmmov 0   ;;  %v223_v8 = vlaneseq  ;;  %s480_s27 = sshll.u32 %s748_s25, 3 }
  0x3d   : > { %603 = vset.pattern.permute.xlu0 %v768_v3  ;;  %vm219_vm1 = vcmp.gt.s32.totalorder %v218_v1, 0  ;;  %491 = vmatprep.subr.mxu0 %v769_v4  ;;  %v231_v5 = vld [vmem:[%s1050_s2] sm:$0xff]  ;;  %vm233_vm4 = vcmask 130048   ;;  %v312_v13 = vstv %s480_s27  ;;  %s483_s7 = sshll.u32 %s752_s26, 1  ;;  %v314_v15 = vstv %s928_s10  ;;  %s350_s12 = sshll.u32 %s196_s19, 4  ;;  %s959_s12 = int_to_ptr.vmem [resolvable:$true] %s350_s12 }
  0x3e   : > { %v220_v6 = vsel %vm219_vm1, %v218_v1, 0  ;;  %492 = vmatpush3.msra.mxu0 %v232_v2  ;;  %495 = vmatprep.mubr.msk.f32.mxu0 %vm770_vm2, %v769_v4  ;;  %v224_v9 = vand.u32 127, %v223_v8  ;;  %v311_v12 = vshrl.u32 %v223_v8, 7  ;;  %s346_s15 = sadd.s32 %s748_s25, %s483_s7  ;;  %vm307_vm7 = vcmask 261120   ;;  %s331_s25 = scalar_lea.sflag [#allocation5], %s194_s5 }
  0x3f   : > { %vm221_vm3 = vcmp.lt.s32.totalorder %v220_v6, 15  ;;  %493 = vmatprep.subr.mxu0 %v769_v4  ;;  %s484_s16 = sshll.u32 %s346_s15, 7  ;;  %s616_s10 = scalar_lea.vmem %s959_s12, 128 }
  0x40   : > { %v222_v7 = vsel %vm221_vm3, %v220_v6, 15  ;;  %494 = vmatpush3.msra.mxu0 %v231_v5  ;;  %v313_v14 = vadd.s32 %v312_v13, %v311_v12  ;;  %s957_s6 = scalar_lea.hbm %s1051_s3, %s484_s16  ;;  %p617_p13 = scmp.ne.s32.totalorder %s959_s12, %s616_s10 }
  0x41   : > { %226 = vperm.xlu0 %603, %v222_v7   ;;  %s771_s27 = smov [#allocation4]  }
  0x42   : > { %vm315_vm6 = vcmp.lt.s32.totalorder %v313_v14, %v314_v15  ;;  %p618_p0 = pnand %p617_p13, %p874_p8  ;;  %s620_s7 = sshll.u32 %s771_s27, 4  ;;  %s621_s7 = int_to_ptr.vmem [resolvable:$false] %s620_s7 }
  0x43   : > { %v481_v16 = vsel %vm315_vm6, 1.0, %v769_v4  ;;  %s622_s15 = scalar_lea.vmem %s621_s7, 256  ;;  %p623_p2 = scmp.lt.s32.totalorder %s959_s12, %s621_s7 }
  0x44   : > { %p619_p1 = pneg %p618_p0  ;;  %p624_p5 = scmp.lt.s32.totalorder %s622_s15, %s616_s10 }
  0x46   : > { %p625_p6 = por %p624_p5, %p623_p2 }
  0x48   : > { %p626_p9 = pnand %p625_p6, %p619_p1 }
  0xbc   : > { %v227_v10 = vpop.permute.xlu0 %226 }
  0xbd   : > { %vm228_vm5 = vcmp.eq.s32.totalorder %v227_v10, %v224_v9 }
  0xbe   : > { %v478_v11 = vsel %vm228_vm5, 1.0, %v769_v4 }
  0xbf   : > { %496 = vmatmul.mubr.msk.f32.vlgmr.msra.gmra.mxu0 %vm233_vm4, %v478_v11 }
 0x17f   : > { %v303_v17 = vpop.f32.mrf.mxu0 }
 0x180   : > { %308 = vst.msk [vmem:[%s196_s19] sm:$0xff] %vm307_vm7, %v303_v17  ;;  %v319_v18 = vmul.f32 %v481_v16, %v303_v17 }
 0x181   : > { %v497_v19 = vpop.f32.mrf.mxu0 }
 0x182   : > { %629 = shalt.err (!%p626_p9)
}
 0x183   : > { %s630_s19 = scalar_lea.hbm %s957_s6, 128  ;;  %s634_s16 = scalar_lea.hbm %s1051_s3, 512 }
 0x184   : > { %p631_p7 = scmp.ne.s32.totalorder %s957_s6, %s630_s19  ;;  %p635_p13 = scmp.lt.s32.totalorder %s957_s6, %s1051_s3 }
 0x185   : > { %p636_p0 = scmp.lt.s32.totalorder %s634_s16, %s630_s19 }
 0x186   : > { %p632_p10 = pnand %p631_p7, %p874_p8 }
 0x187   : > { %p637_p1 = por %p636_p0, %p635_p13 }
 0x188   : > { %p633_p11 = pneg %p632_p10 }
 0x18a   : > { %p638_p2 = pnand %p637_p1, %p633_p11 }
 0x18c   : > { %641 = shalt.err (!%p638_p2)
}
 0x18d   : > { %498 = dma.vmem_to_hbm [thread:$0]  (%p874_p8), %s959_s12, 128, %s957_s6, %s331_s25   ;;  %v320_v20 = vsel %vm307_vm7, %v319_v18, 0.0  ;;  %v318_v26 = vld [vmem:[%s938_s24] sm:$0x1]  ;;  %vm328_vm8 = vcmask 253952  }
 0x18e   : > { %v321_v21 = vrot.slane %v320_v20, 4  ;;  %s485_s10 = sshll.u32 %s752_s26, 4  ;;  %s363_s27 = sshll.u32 %s938_s24, 4  ;;  %s364_s27 = int_to_ptr.vmem [resolvable:$true] %s363_s27 }
 0x18f   : > { %s361_s15 = scalar_lea.hbm %s1052_s4, %s485_s10  ;;  %s336_s12 = scalar_lea.sflag [#allocation7], %s201_s8 }
 0x190   : > { %v322_v22 = vadd.f32 %v321_v21, %v320_v20  ;;  %s642_s6 = scalar_lea.vmem %s364_s27, 16  ;;  %s772_s25 = smov [#allocation6]  }
 0x191   : > { %p643_p8 = scmp.ne.s32.totalorder %s364_s27, %s642_s6  ;;  %s646_s19 = sshll.u32 %s772_s25, 4  ;;  %s647_s19 = int_to_ptr.vmem [resolvable:$false] %s646_s19 }
 0x192   : > { %v323_v23 = vrot.slane %v322_v22, 2  ;;  %s648_s26 = scalar_lea.vmem %s647_s19, 32  ;;  %p649_p9 = scmp.lt.s32.totalorder %s364_s27, %s647_s19 }
 0x193   : > { %p644_p5 = pnand %p643_p8, %p901_p3  ;;  %p650_p7 = scmp.lt.s32.totalorder %s648_s26, %s642_s6 }
 0x194   : > { %v324_v24 = vadd.f32 %v323_v23, %v322_v22 }
 0x195   : > { %p645_p6 = pneg %p644_p5  ;;  %p651_p10 = por %p650_p7, %p649_p9 }
 0x196   : > { %v325_v25 = vrot.slane %v324_v24, 1 }
 0x197   : > { %p652_p11 = pnand %p651_p10, %p645_p6 }
 0x198   : > { %v326_v27 = vadd.f32 %v325_v25, %v324_v24 }
 0x19a   : > { %v327_v28 = vadd.f32 %v326_v27, %v318_v26 }
 0x19c   : > { %329 = vst.msk [vmem:[%s938_s24] sm:$0x1] %vm328_vm8, %v327_v28 }
 0x19d   : > { %655 = shalt.err (!%p652_p11)
}
 0x19e   : > { %s656_s5 = scalar_lea.hbm %s361_s15, 16  ;;  %s660_s9 = scalar_lea.hbm %s1052_s4, 32 }
 0x19f   : > { %p657_p13 = scmp.ne.s32.totalorder %s361_s15, %s656_s5  ;;  %p661_p2 = scmp.lt.s32.totalorder %s361_s15, %s1052_s4 }
 0x1a0   : > { %p662_p8 = scmp.lt.s32.totalorder %s660_s9, %s656_s5 }
 0x1a1   : > { %p658_p0 = pnand %p657_p13, %p901_p3 }
 0x1a2   : > { %p663_p5 = por %p662_p8, %p661_p2 }
 0x1a3   : > { %p659_p1 = pneg %p658_p0 }
 0x1a5   : > { %p664_p4 = pnand %p663_p5, %p659_p1 }
 0x1a7   : > { %667 = shalt.err (!%p664_p4)
}
 0x1a8   : > { %499 = dma.vmem_to_hbm [thread:$0]  (%p901_p3), %s364_s27, 16, %s361_s15, %s336_s12  }
 0x1a9 PF: > { %p509_p6 = scmp.ge.s32.totalorder %s764_s29, 2  ;;  %s375_s28 = sand.u32 1, %s736_s22  }
 0x1aa   : > { %s376_s10 = scalar_lea.sflag [#allocation5], %s375_s28 }
 0x1ab   : > { %p503_p9 = pnand %p509_p6, %p889_p12 }
 0x1ad   : > { %p504_p7 = pneg %p503_p9 }
 0x1af   : > { %715 = dma.done.wait (%p504_p7), %s376_s10, 128  }
 0x1b0   : > { %717 = vsyncadd (%p504_p7), %s376_s10, 4294967168  ;;  %s384_s11 = sand.u32 1, %s724_s20   ;;  %p1070_p10 = scmp.ne.s32.totalorder %s1069_s30, 0 }
 0x1b1   : > { %s385_s17 = scalar_lea.sflag [#allocation7], %s384_s11 }
 0x1b2   : > { %p506_p4 = pnand %p509_p6, %p1070_p10 }
 0x1b4   : > { %p507_p11 = pneg %p506_p4 }
 0x1b6   : > { %719 = dma.done.wait (%p507_p11), %s385_s17, 16  }
 0x1b7   : > { %721 = vsyncadd (%p507_p11), %s385_s17, 4294967280  ;;  %s27_s29 = sadd.s32 1, %s764_s29   ;;  %s1071_s14 = sld [smem:[#allocation11_spill]] }
 0x1b8   : > { %p24_p3 = scmp.ge.s32.totalorder %s27_s29, 6   ;;  %s1072_s24 = sld [smem:[#allocation16_spill]] }
 0x1b9   : > { %s1073_s25 = sld [smem:[#allocation12_spill]]  ;;  %s1077_s20 = smov %s728_s0 }
 0x1ba   : > { %s1074_s26 = sld [smem:[#allocation13_spill]]  ;;  %s1078_s0 = smov %s732_s21 }
 0x1bb   : > { %s1075_s27 = sld [smem:[#allocation14_spill]]  ;;  %s1079_s21 = smov %s906_s18 }
 0x1bc   : > { %s1076_s28 = sld [smem:[#allocation15_spill]]  ;;  %s1080_s22 = smov %s740_s23 }
 0x1bd   : > { %s1081_s23 = smov %s1071_s14  ;;  %26 = sbr.rel (!%p24_p3) target bundleno = 24 (0x18), region = 84 }
 0x1c2   :  { %389 = vsyncpa [#allocation5], 1 }
 0x1c3   :  { %391 = vsyncpa [#allocation5 + $0x1], 1 }
 0x1c4   :  { %392 = vsyncpa [#allocation7], 1 }
 0x1c5   :  { %394 = vsyncpa [#allocation7 + $0x1], 1 }

</bundles_post_ra>
